<compile_context>
chip_gen: v6e
topology: v6e:2x2x1
jax: 0.10.0
libtpu: 0.0.40
codegen_flags: <defaults>
</compile_context>

<pallas_src>
import functools
import math

import jax
import jax.numpy as jnp
from jax.experimental import pallas as pl
from jax.experimental.pallas import tpu as pltpu

LN_EPS = 1e-12  # BertLayerNorm variance_epsilon


def _round_up(x, m):
    return (x + m - 1) // m * m


def bert_output_kernel(x_ref, res_ref, w_ref, b_ref, gamma_ref, beta_ref, o_ref):
    # x_ref:     (tm, I)   tile of hidden_states (dense input)
    # res_ref:   (tm, H)   tile of input_tensor (residual)
    # w_ref:     (I,  H)   dense weight (transposed vs. torch Linear.weight)
    # b_ref:     (1,  H)   dense bias
    # gamma_ref: (1,  H)   LayerNorm scale
    # beta_ref:  (1,  H)   LayerNorm shift
    # o_ref:     (tm, H)   output tile
    # MXU matmul; bf16 or f32 operands, always f32 accumulation.
    h = jnp.dot(x_ref[...], w_ref[...], preferred_element_type=jnp.float32)
    h = h + b_ref[...].astype(jnp.float32)
    # dropout: identity in eval mode
    h = h + res_ref[...].astype(jnp.float32)

    # LayerNorm epilogue in f32 (two-pass centered variance for stability).
    mean = jnp.mean(h, axis=-1, keepdims=True)
    centered = h - mean
    var = jnp.mean(centered * centered, axis=-1, keepdims=True)
    norm = centered * jax.lax.rsqrt(var + LN_EPS)  # rsqrt -> EUP slot
    out = norm * gamma_ref[...].astype(jnp.float32) + beta_ref[...].astype(jnp.float32)
    o_ref[...] = out.astype(o_ref.dtype)


@functools.partial(jax.jit, static_argnames=("tile_m",))
def _bert_output_padded(hidden_states, input_tensor, w, b, gamma, beta, *, tile_m):
    rows, inter = hidden_states.shape
    hidden = input_tensor.shape[1]
    grid = (rows // tile_m,)

    # Explicit VMEM budget: single-buffered resident weight + params, plus
    # double-buffered streamed tiles (x, residual, out), with 25% headroom.
    itemsize = jnp.dtype(hidden_states.dtype).itemsize
    weight_bytes = inter * hidden * jnp.dtype(w.dtype).itemsize
    param_bytes = 3 * hidden * jnp.dtype(b.dtype).itemsize
    tile_bytes = 2 * tile_m * (inter + 2 * hidden) * itemsize
    need = weight_bytes + param_bytes + tile_bytes
    # Clamp to [16 MiB, 64 MiB] so the limit stays within every generation's
    # physical VMEM (v7x has 64 MiB/TC).  For f32 BERT-large prefer bf16
    # weights (or add a K grid axis) on v7x.
    vmem_limit = int(min(max(int(need * 1.25), 16 * 1024 * 1024), 64 * 1024 * 1024))

    resident = pl.Buffered(1)  # grid-invariant operands: no double-buffering

    # Advisory cost estimate for XLA's scheduler around the custom call.
    flops = 2 * rows * inter * hidden + 8 * rows * hidden
    bytes_accessed = (
        rows * inter * itemsize                   # hidden_states
        + 2 * rows * hidden * itemsize            # residual in + output out
        + weight_bytes + param_bytes
    )
    cost = pl.CostEstimate(flops=flops, transcendentals=rows,
                           bytes_accessed=bytes_accessed)

    return pl.pallas_call(
        bert_output_kernel,
        out_shape=jax.ShapeDtypeStruct((rows, hidden), hidden_states.dtype),
        grid_spec=pltpu.PrefetchScalarGridSpec(
            num_scalar_prefetch=0,
            grid=grid,
            in_specs=[
                pl.BlockSpec((tile_m, inter), lambda i: (i, 0)),    # hidden_states tile
                pl.BlockSpec((tile_m, hidden), lambda i: (i, 0)),   # residual tile
                pl.BlockSpec((inter, hidden), lambda i: (0, 0),     # weight (resident)
                             pipeline_mode=resident),
                pl.BlockSpec((1, hidden), lambda i: (0, 0),         # bias
                             pipeline_mode=resident),
                pl.BlockSpec((1, hidden), lambda i: (0, 0),         # gamma
                             pipeline_mode=resident),
                pl.BlockSpec((1, hidden), lambda i: (0, 0),         # beta
                             pipeline_mode=resident),
            ],
            out_specs=pl.BlockSpec((tile_m, hidden), lambda i: (i, 0)),
        ),
        compiler_params=pltpu.CompilerParams(
            dimension_semantics=("parallel",),
            vmem_limit_bytes=vmem_limit,
        ),
        cost_estimate=cost,
    )(hidden_states, input_tensor, w, b, gamma, beta)


def bert_output(hidden_states, input_tensor, w, b, gamma, beta, *, tile_m=256):
    """hidden_states: [rows, I]; input_tensor: [rows, H] -> [rows, H].

    tile_m=256 is the production default (fills MXU M dim, amortizes the
    ~0.35us/step grid overhead).  Small row counts are handled by clamping
    tile_m and zero-padding rows to a sublane-aligned tile multiple (padded
    rows are dropped on return).
    """
    rows, _ = hidden_states.shape
    sub = 16 if hidden_states.dtype == jnp.bfloat16 else 8  # sublane packing
    tile_m_eff = min(tile_m, _round_up(rows, sub))
    tile_m_eff = max(sub, _round_up(tile_m_eff, sub))
    rows_pad = _round_up(rows, tile_m_eff)
    if rows_pad != rows:
        pad = rows_pad - rows
        hidden_states = jnp.pad(hidden_states, ((0, pad), (0, 0)))
        input_tensor = jnp.pad(input_tensor, ((0, pad), (0, 0)))
    out = _bert_output_padded(hidden_states, input_tensor, w, b, gamma, beta,
                              tile_m=tile_m_eff)
    return out[:rows] if rows_pad != rows else out


def reference(hidden_states, input_tensor, w, b, gamma, beta):
    h = hidden_states @ w + b
    h = h + input_tensor
    mean = jnp.mean(h, axis=-1, keepdims=True)
    var = jnp.mean((h - mean) ** 2, axis=-1, keepdims=True)
    return (h - mean) / jnp.sqrt(var + LN_EPS) * gamma + beta


if __name__ == "__main__":
    # Small BERT-like config with lane-dense H: batch=2, seq=8, hidden=128,
    # intermediate=512 (4x ratio), rows = 16.
    batch, seq, hidden, inter = 2, 8, 128, 512
    rows = batch * seq

    key = jax.random.PRNGKey(0)
    k1, k2, k3, k4 = jax.random.split(key, 4)

    hidden_states = jax.random.normal(k1, (rows, inter), dtype=jnp.float32)
    input_tensor = jax.random.normal(k2, (rows, hidden), dtype=jnp.float32)

    # Deterministic parameter init (nn.Linear-style uniform for dense;
    # LayerNorm gamma=1, beta=0).
    bound = 1.0 / math.sqrt(inter)
    w = jax.random.uniform(k3, (inter, hidden), jnp.float32, -bound, bound)
    b = jax.random.uniform(k4, (1, hidden), jnp.float32, -bound, bound)
    gamma = jnp.ones((1, hidden), jnp.float32)
    beta = jnp.zeros((1, hidden), jnp.float32)

    # f32 path (tight tolerance vs. f32 reference).
    out = bert_output(hidden_states, input_tensor, w, b, gamma, beta)
    out = jax.block_until_ready(out)
    ref = reference(hidden_states, input_tensor, w, b, gamma, beta)
    assert out.shape == (rows, hidden)
    assert jnp.allclose(out, ref, atol=1e-4, rtol=1e-4), "f32 mismatch vs reference"

    # bf16 path (production MXU-friendly datapath, f32 accumulation inside).
    hs_b = hidden_states.astype(jnp.bfloat16)
    res_b = input_tensor.astype(jnp.bfloat16)
    w_b, b_b = w.astype(jnp.bfloat16), b.astype(jnp.bfloat16)
    g_b, be_b = gamma.astype(jnp.bfloat16), beta.astype(jnp.bfloat16)
    out_b = jax.block_until_ready(bert_output(hs_b, res_b, w_b, b_b, g_b, be_b))
    ref_b = reference(hs_b.astype(jnp.float32), res_b.astype(jnp.float32),
                      w_b.astype(jnp.float32), b_b.astype(jnp.float32),
                      g_b.astype(jnp.float32), be_b.astype(jnp.float32))
    assert out_b.shape == (rows, hidden)
    assert jnp.allclose(out_b.astype(jnp.float32), ref_b, atol=3e-2, rtol=3e-2), \
        "bf16 mismatch vs reference"

    print("KERNEL_OK")
</pallas_src>

<mosaic_0001>
module attributes {stable_mosaic.version = 11 : i64} {
  func.func @bert_output_kernel(%arg0: i32, %arg1: memref<16x512xf32, #tpu.memory_space<vmem>>, %arg2: memref<16x128xf32, #tpu.memory_space<vmem>>, %arg3: memref<512x128xf32, #tpu.memory_space<vmem>>, %arg4: memref<1x128xf32, #tpu.memory_space<vmem>>, %arg5: memref<1x128xf32, #tpu.memory_space<vmem>>, %arg6: memref<1x128xf32, #tpu.memory_space<vmem>>, %arg7: memref<16x128xf32, #tpu.memory_space<vmem>>) attributes {dimension_semantics = [#tpu.dimension_semantics<parallel>], iteration_bounds = array<i64: 1>, scalar_prefetch = 0 : i64, scratch_operands = 0 : i64, tpu.core_type = #tpu.core_type<tc>, window_params = [{transform_indices = @transform_0, window_bounds = array<i64: 16, 512>}, {transform_indices = @transform_1, window_bounds = array<i64: 16, 128>}, {pipeline_mode = #tpu.pipeline_mode<synchronous>, transform_indices = @transform_2, window_bounds = array<i64: 512, 128>}, {pipeline_mode = #tpu.pipeline_mode<synchronous>, transform_indices = @transform_3, window_bounds = array<i64: 1, 128>}, {pipeline_mode = #tpu.pipeline_mode<synchronous>, transform_indices = @transform_4, window_bounds = array<i64: 1, 128>}, {pipeline_mode = #tpu.pipeline_mode<synchronous>, transform_indices = @transform_5, window_bounds = array<i64: 1, 128>}, {transform_indices = @transform_6, window_bounds = array<i64: 16, 128>}]} {
    %c0 = arith.constant 0 : index
    %c0_0 = arith.constant 0 : index
    %0 = vector.load %arg1[%c0, %c0_0] : memref<16x512xf32, #tpu.memory_space<vmem>>, vector<16x512xf32>
    %c0_1 = arith.constant 0 : index
    %c0_2 = arith.constant 0 : index
    %1 = vector.load %arg3[%c0_1, %c0_2] : memref<512x128xf32, #tpu.memory_space<vmem>>, vector<512x128xf32>
    %cst = arith.constant dense<0.000000e+00> : vector<16x128xf32>
    %2 = tpu.matmul %0, %1, %cst {dimension_numbers = #tpu.dot_dimension_numbers<[1], [0], [0], [1], [0, 0, 1, 1], [], []>} : vector<16x512xf32>, vector<512x128xf32>, vector<16x128xf32> -> vector<16x128xf32>
    %c0_3 = arith.constant 0 : index
    %c0_4 = arith.constant 0 : index
    %3 = vector.load %arg4[%c0_3, %c0_4] : memref<1x128xf32, #tpu.memory_space<vmem>>, vector<1x128xf32>
    %4 = vector.broadcast %3 : vector<1x128xf32> to vector<16x128xf32>
    %5 = arith.addf %2, %4 : vector<16x128xf32>
    %c0_5 = arith.constant 0 : index
    %c0_6 = arith.constant 0 : index
    %6 = vector.load %arg2[%c0_5, %c0_6] : memref<16x128xf32, #tpu.memory_space<vmem>>, vector<16x128xf32>
    %7 = arith.addf %5, %6 : vector<16x128xf32>
    %cst_7 = arith.constant dense<0.000000e+00> : vector<16xf32>
    %8 = vector.multi_reduction <add>, %7, %cst_7 [1] : vector<16x128xf32> to vector<16xf32>
    %9 = vector.shape_cast %8 : vector<16xf32> to vector<16x1xf32>
    %cst_8 = arith.constant 1.280000e+02 : f32
    %10 = vector.broadcast %cst_8 : f32 to vector<16x1xf32>
    %11 = arith.divf %9, %10 : vector<16x1xf32>
    %12 = vector.broadcast %11 : vector<16x1xf32> to vector<16x128xf32>
    %13 = arith.subf %7, %12 : vector<16x128xf32>
    %14 = arith.mulf %13, %13 : vector<16x128xf32>
    %cst_9 = arith.constant dense<0.000000e+00> : vector<16xf32>
    %15 = vector.multi_reduction <add>, %14, %cst_9 [1] : vector<16x128xf32> to vector<16xf32>
    %16 = vector.shape_cast %15 : vector<16xf32> to vector<16x1xf32>
    %cst_10 = arith.constant 1.280000e+02 : f32
    %17 = vector.broadcast %cst_10 : f32 to vector<16x1xf32>
    %18 = arith.divf %16, %17 : vector<16x1xf32>
    %cst_11 = arith.constant 9.99999996E-13 : f32
    %19 = vector.broadcast %cst_11 : f32 to vector<16x1xf32>
    %20 = arith.addf %18, %19 : vector<16x1xf32>
    %21 = math.rsqrt %20 : vector<16x1xf32>
    %22 = vector.broadcast %21 : vector<16x1xf32> to vector<16x128xf32>
    %23 = arith.mulf %13, %22 : vector<16x128xf32>
    %c0_12 = arith.constant 0 : index
    %c0_13 = arith.constant 0 : index
    %24 = vector.load %arg5[%c0_12, %c0_13] : memref<1x128xf32, #tpu.memory_space<vmem>>, vector<1x128xf32>
    %25 = vector.broadcast %24 : vector<1x128xf32> to vector<16x128xf32>
    %26 = arith.mulf %23, %25 : vector<16x128xf32>
    %c0_14 = arith.constant 0 : index
    %c0_15 = arith.constant 0 : index
    %27 = vector.load %arg6[%c0_14, %c0_15] : memref<1x128xf32, #tpu.memory_space<vmem>>, vector<1x128xf32>
    %28 = vector.broadcast %27 : vector<1x128xf32> to vector<16x128xf32>
    %29 = arith.addf %26, %28 : vector<16x128xf32>
    %c0_16 = arith.constant 0 : index
    %c0_17 = arith.constant 0 : index
    %30 = vector.load %arg7[%c0_16, %c0_17] : memref<16x128xf32, #tpu.memory_space<vmem>>, vector<16x128xf32>
    tpu.vector_store %arg7[%c0_16, %c0_17], %29 {strides = array<i32>} : memref<16x128xf32, #tpu.memory_space<vmem>>, vector<16x128xf32>,
    return
  }
  func.func @transform_0(%arg0: i32) -> (i32, i32) {
    %c0_i32 = arith.constant 0 : i32
    %c0_i32_0 = arith.constant 0 : i32
    return %arg0, %c0_i32 : i32, i32
  }
  func.func @transform_1(%arg0: i32) -> (i32, i32) {
    %c0_i32 = arith.constant 0 : i32
    %c0_i32_0 = arith.constant 0 : i32
    return %arg0, %c0_i32 : i32, i32
  }
  func.func @transform_2(%arg0: i32) -> (i32, i32) {
    %c0_i32 = arith.constant 0 : i32
    %c0_i32_0 = arith.constant 0 : i32
    %c0_i32_1 = arith.constant 0 : i32
    return %c0_i32, %c0_i32_0 : i32, i32
  }
  func.func @transform_3(%arg0: i32) -> (i32, i32) {
    %c0_i32 = arith.constant 0 : i32
    %c0_i32_0 = arith.constant 0 : i32
    %c0_i32_1 = arith.constant 0 : i32
    return %c0_i32, %c0_i32_0 : i32, i32
  }
  func.func @transform_4(%arg0: i32) -> (i32, i32) {
    %c0_i32 = arith.constant 0 : i32
    %c0_i32_0 = arith.constant 0 : i32
    %c0_i32_1 = arith.constant 0 : i32
    return %c0_i32, %c0_i32_0 : i32, i32
  }
  func.func @transform_5(%arg0: i32) -> (i32, i32) {
    %c0_i32 = arith.constant 0 : i32
    %c0_i32_0 = arith.constant 0 : i32
    %c0_i32_1 = arith.constant 0 : i32
    return %c0_i32, %c0_i32_0 : i32, i32
  }
  func.func @transform_6(%arg0: i32) -> (i32, i32) {
    %c0_i32 = arith.constant 0 : i32
    %c0_i32_0 = arith.constant 0 : i32
    return %arg0, %c0_i32 : i32, i32
  }
}

</mosaic_0001>

<bundles_post_ra>
// kernel: _bert_output_padded.1
= control target key start
LH: loop header
LB: loop body
LE: loop exit
PB: predicated region body
PF: predicated region fallthrough
CT: control target
= control target key end

     0   :  { %11 = vsyncpa [#allocation3], 0  ;;  %s609_s0 = inlined_call_operand.hbm [shape: f32[16,512], index: 0, kind: input, shape index: {}]   ;;  %s610_s1 = inlined_call_operand.hbm [shape: f32[16,128], index: 1, kind: input, shape index: {}]   ;;  %s611_s2 = inlined_call_operand.hbm [shape: f32[512,128], index: 2, kind: input, shape index: {}]   ;;  %s612_s3 = inlined_call_operand.vmem [shape: f32[1,128], index: 3, kind: input, shape index: {}]   ;;  %s613_s4 = inlined_call_operand.vmem [shape: f32[1,128], index: 4, kind: input, shape index: {}]   ;;  %s614_s5 = inlined_call_operand.vmem [shape: f32[1,128], index: 5, kind: input, shape index: {}]   ;;  %s615_s6 = inlined_call_operand.hbm [shape: f32[16,128], index: 6, kind: output, shape index: {}]  }
   0x1   :  { %12 = vsyncpa [#allocation6], 0 }
   0x2   :  { %13 = vsyncpa [#allocation4], 0  ;;  %s536_s21 = smov [#allocation5]  }
   0x3   :  { %s31_s22 = sshll.u32 %s536_s21, 4  ;;  %s32_s22 = int_to_ptr.vmem [resolvable:$true] %s31_s22 }
   0x4   :  { %s458_s23 = scalar_lea.vmem %s32_s22, 256  ;;  %p463_p1 = scmp.lt.s32.totalorder %s32_s22, %s32_s22 }
   0x5   :  { %p459_p0 = scmp.ne.s32.totalorder %s32_s22, %s458_s23  ;;  %p464_p2 = scmp.lt.s32.totalorder %s458_s23, %s458_s23 }
   0x7   :  { %p465_p3 = por %p464_p2, %p463_p1 }
   0x9   :  { %p466_p4 = pnand %p465_p3, %p459_p0 }
   0xb   :  { %469 = shalt.err (!%p466_p4)
}
   0xc   :  { %s537_s24 = smov 128   ;;  %s538_s25 = smov 8  }
   0xd   :  { %37 = dma.hbm_to_vmem [thread:$0]  %s610_s1, 256, %s32_s22, [#allocation6], %s537_s24, %s537_s24, %s538_s25  }
   0xe   :  { %s539_s28 = smov [#allocation2]  }
   0xf   :  { %s19_s29 = sshll.u32 %s539_s28, 4  ;;  %s20_s29 = int_to_ptr.vmem [resolvable:$true] %s19_s29 }
  0x10   :  { %s478_s30 = scalar_lea.vmem %s20_s29, 1024  ;;  %p483_p6 = scmp.lt.s32.totalorder %s20_s29, %s20_s29 }
  0x11   :  { %p479_p5 = scmp.ne.s32.totalorder %s20_s29, %s478_s30  ;;  %p484_p7 = scmp.lt.s32.totalorder %s478_s30, %s478_s30 }
  0x13   :  { %p485_p8 = por %p484_p7, %p483_p6 }
  0x15   :  { %p486_p9 = pnand %p485_p8, %p479_p5 }
  0x17   :  { %489 = shalt.err (!%p486_p9)
}
  0x18   :  { %s540_s7 = smov 512   ;;  %s541_s8 = smov 32  }
  0x19   :  { %25 = dma.hbm_to_vmem [thread:$0]  %s609_s0, 1024, %s20_s29, [#allocation3], %s540_s7, %s540_s7, %s541_s8  }
  0x1a   :  { %s542_s11 = smov [#allocation7]  }
  0x1b   :  { %s43_s12 = sshll.u32 %s542_s11, 4  ;;  %s44_s12 = int_to_ptr.vmem [resolvable:$true] %s43_s12 }
  0x1c   :  { %s498_s1 = scalar_lea.vmem %s44_s12, 8192  ;;  %p503_p11 = scmp.lt.s32.totalorder %s44_s12, %s44_s12 }
  0x1d   :  { %p499_p10 = scmp.ne.s32.totalorder %s44_s12, %s498_s1  ;;  %p504_p12 = scmp.lt.s32.totalorder %s498_s1, %s498_s1 }
  0x1f   :  { %p505_p13 = por %p504_p12, %p503_p11 }
  0x21   :  { %p506_p0 = pnand %p505_p13, %p499_p10 }
  0x23   :  { %509 = shalt.err (!%p506_p0)
}
  0x24   :  { %49 = dma.hbm_to_vmem [thread:$0]  %s611_s2, 8192, %s44_s12, [#allocation6], %s537_s24, %s537_s24, %s538_s25  }
  0x25   :  { %530 = dma.done.wait [#allocation3], 1024  }
  0x26   :  { %531 = vsyncadd [#allocation3], 4294966272 }
  0x27   :  { %532 = dma.done.wait [#allocation6], 8448  }
  0x28   :  { %533 = vsyncadd [#allocation6], 4294958848  ;;  %v104_v0 = vld [vmem:[#allocation7 + $0xf8] sm:$0xff]  ;;  %v103_v4 = vld [vmem:[#allocation7 + $0xf0] sm:$0xff]  ;;  %s543_s18 = smov [#allocation8]  }
  0x29   :  { %v136_v1 = vld [vmem:[#allocation7 + $0x1f8] sm:$0xff]  ;;  %362 = vmatprep.subr.mxu0 %v104_v0  ;;  %v135_v5 = vld [vmem:[#allocation7 + $0x1f0] sm:$0xff]  ;;  %v102_v8 = vld [vmem:[#allocation7 + $0xe8] sm:$0xff]  ;;  %s346_s19 = sshll.u32 %s543_s18, 4  ;;  %s347_s19 = int_to_ptr.vmem [resolvable:$true] %s346_s19 }
  0x2a   :  { %v88_v2 = vld [vmem:[#allocation7 + $0x78] sm:$0xff]  ;;  %400 = vmatprep.subr.mxu1 %v136_v1  ;;  %v87_v6 = vld [vmem:[#allocation7 + $0x70] sm:$0xff]  ;;  %v134_v9 = vld [vmem:[#allocation7 + $0x1e8] sm:$0xff]  ;;  %s510_s20 = scalar_lea.vmem %s347_s19, 256  ;;  %p515_p2 = scmp.lt.s32.totalorder %s347_s19, %s347_s19 }
  0x2b   :  { %v120_v3 = vld [vmem:[#allocation7 + $0x178] sm:$0xff]  ;;  %363 = vmatpush3.msra.mxu0 %v88_v2  ;;  %v119_v7 = vld [vmem:[#allocation7 + $0x170] sm:$0xff]  ;;  %v86_v10 = vld [vmem:[#allocation7 + $0x68] sm:$0xff]  ;;  %p511_p1 = scmp.ne.s32.totalorder %s347_s19, %s510_s20  ;;  %p516_p3 = scmp.lt.s32.totalorder %s510_s20, %s510_s20 }
  0x2c   :  { %401 = vmatpush3.msra.mxu1 %v120_v3  ;;  %364 = vmatprep.subr.mxu0 %v103_v4  ;;  %v118_v11 = vld [vmem:[#allocation7 + $0x168] sm:$0xff]  ;;  %v101_v12 = vld [vmem:[#allocation7 + $0xe0] sm:$0xff]  ;;  %v100_v16 = vld [vmem:[#allocation7 + $0xd8] sm:$0xff] }
  0x2d   :  { %402 = vmatprep.subr.mxu1 %v135_v5  ;;  %365 = vmatpush3.msra.mxu0 %v87_v6  ;;  %v133_v13 = vld [vmem:[#allocation7 + $0x1e0] sm:$0xff]  ;;  %v132_v17 = vld [vmem:[#allocation7 + $0x1d8] sm:$0xff]  ;;  %v99_v20 = vld [vmem:[#allocation7 + $0xd0] sm:$0xff]  ;;  %p517_p4 = por %p516_p3, %p515_p2 }
  0x2e   :  { %403 = vmatpush3.msra.mxu1 %v119_v7  ;;  %366 = vmatprep.subr.mxu0 %v102_v8  ;;  %v85_v14 = vld [vmem:[#allocation7 + $0x60] sm:$0xff]  ;;  %v84_v18 = vld [vmem:[#allocation7 + $0x58] sm:$0xff]  ;;  %v131_v21 = vld [vmem:[#allocation7 + $0x1d0] sm:$0xff] }
  0x2f   :  { %404 = vmatprep.subr.mxu1 %v134_v9  ;;  %v117_v15 = vld [vmem:[#allocation7 + $0x160] sm:$0xff]  ;;  %367 = vmatpush3.msra.mxu0 %v86_v10  ;;  %v116_v19 = vld [vmem:[#allocation7 + $0x158] sm:$0xff]  ;;  %v83_v22 = vld [vmem:[#allocation7 + $0x50] sm:$0xff]  ;;  %p518_p5 = pnand %p517_p4, %p511_p1 }
  0x30   :  { %405 = vmatpush3.msra.mxu1 %v118_v11  ;;  %368 = vmatprep.subr.mxu0 %v101_v12  ;;  %v115_v23 = vld [vmem:[#allocation7 + $0x150] sm:$0xff]  ;;  %v98_v24 = vld [vmem:[#allocation7 + $0xc8] sm:$0xff]  ;;  %v97_v28 = vld [vmem:[#allocation7 + $0xc0] sm:$0xff] }
  0x31   :  { %406 = vmatprep.subr.mxu1 %v133_v13  ;;  %369 = vmatpush3.msra.mxu0 %v85_v14  ;;  %v130_v25 = vld [vmem:[#allocation7 + $0x1c8] sm:$0xff]  ;;  %v129_v29 = vld [vmem:[#allocation7 + $0x1c0] sm:$0xff]  ;;  %v96_v32 = vld [vmem:[#allocation7 + $0xb8] sm:$0xff] }
  0x32   :  { %407 = vmatpush3.msra.mxu1 %v117_v15  ;;  %370 = vmatprep.subr.mxu0 %v100_v16  ;;  %v82_v26 = vld [vmem:[#allocation7 + $0x48] sm:$0xff]  ;;  %v81_v30 = vld [vmem:[#allocation7 + $0x40] sm:$0xff]  ;;  %v128_v33 = vld [vmem:[#allocation7 + $0x1b8] sm:$0xff] }
  0x33   :  { %408 = vmatprep.subr.mxu1 %v132_v17  ;;  %371 = vmatpush3.msra.mxu0 %v84_v18  ;;  %v114_v27 = vld [vmem:[#allocation7 + $0x148] sm:$0xff]  ;;  %v113_v31 = vld [vmem:[#allocation7 + $0x140] sm:$0xff]  ;;  %v80_v34 = vld [vmem:[#allocation7 + $0x38] sm:$0xff] }
  0x34   :  { %409 = vmatpush3.msra.mxu1 %v116_v19  ;;  %372 = vmatprep.subr.mxu0 %v99_v20  ;;  %v112_v35 = vld [vmem:[#allocation7 + $0x138] sm:$0xff]  ;;  %v95_v36 = vld [vmem:[#allocation7 + $0xb0] sm:$0xff]  ;;  %v94_v40 = vld [vmem:[#allocation7 + $0xa8] sm:$0xff] }
  0x35   :  { %410 = vmatprep.subr.mxu1 %v131_v21  ;;  %373 = vmatpush3.msra.mxu0 %v83_v22  ;;  %v127_v37 = vld [vmem:[#allocation7 + $0x1b0] sm:$0xff]  ;;  %v126_v41 = vld [vmem:[#allocation7 + $0x1a8] sm:$0xff]  ;;  %v93_v44 = vld [vmem:[#allocation7 + $0xa0] sm:$0xff] }
  0x36   :  { %411 = vmatpush3.msra.mxu1 %v115_v23  ;;  %374 = vmatprep.subr.mxu0 %v98_v24  ;;  %v79_v38 = vld [vmem:[#allocation7 + $0x30] sm:$0xff]  ;;  %v78_v42 = vld [vmem:[#allocation7 + $0x28] sm:$0xff]  ;;  %v125_v45 = vld [vmem:[#allocation7 + $0x1a0] sm:$0xff] }
  0x37   :  { %412 = vmatprep.subr.mxu1 %v130_v25  ;;  %375 = vmatpush3.msra.mxu0 %v82_v26  ;;  %v111_v39 = vld [vmem:[#allocation7 + $0x130] sm:$0xff]  ;;  %v110_v43 = vld [vmem:[#allocation7 + $0x128] sm:$0xff]  ;;  %v77_v46 = vld [vmem:[#allocation7 + $0x20] sm:$0xff] }
  0x38   :  { %413 = vmatpush3.msra.mxu1 %v114_v27  ;;  %376 = vmatprep.subr.mxu0 %v97_v28  ;;  %v109_v47 = vld [vmem:[#allocation7 + $0x120] sm:$0xff]  ;;  %v92_v48 = vld [vmem:[#allocation7 + $0x98] sm:$0xff]  ;;  %v91_v52 = vld [vmem:[#allocation7 + $0x90] sm:$0xff] }
  0x39   :  { %414 = vmatprep.subr.mxu1 %v129_v29  ;;  %377 = vmatpush3.msra.mxu0 %v81_v30  ;;  %v124_v49 = vld [vmem:[#allocation7 + $0x198] sm:$0xff]  ;;  %v123_v53 = vld [vmem:[#allocation7 + $0x190] sm:$0xff]  ;;  %v90_v56 = vld [vmem:[#allocation7 + $0x88] sm:$0xff] }
  0x3a   :  { %415 = vmatpush3.msra.mxu1 %v113_v31  ;;  %378 = vmatprep.subr.mxu0 %v96_v32  ;;  %v76_v50 = vld [vmem:[#allocation7 + $0x18] sm:$0xff]  ;;  %v75_v54 = vld [vmem:[#allocation7 + $0x10] sm:$0xff]  ;;  %v122_v57 = vld [vmem:[#allocation7 + $0x188] sm:$0xff] }
  0x3b   :  { %416 = vmatprep.subr.mxu1 %v128_v33  ;;  %379 = vmatpush3.msra.mxu0 %v80_v34  ;;  %v108_v51 = vld [vmem:[#allocation7 + $0x118] sm:$0xff]  ;;  %v107_v55 = vld [vmem:[#allocation7 + $0x110] sm:$0xff]  ;;  %v74_v58 = vld [vmem:[#allocation7 + $0x8] sm:$0xff] }
  0x3c   :  { %417 = vmatpush3.msra.mxu1 %v112_v35  ;;  %380 = vmatprep.subr.mxu0 %v95_v36  ;;  %v106_v59 = vld [vmem:[#allocation7 + $0x108] sm:$0xff]  ;;  %v89_v60 = vld [vmem:[#allocation7 + $0x80] sm:$0xff]  ;;  %v66_v63 = vld [vmem:[#allocation2 + $0x8] sm:$0xff] }
  0x3d   :  { %418 = vmatprep.subr.mxu1 %v127_v37  ;;  %381 = vmatpush3.msra.mxu0 %v79_v38  ;;  %v121_v61 = vld [vmem:[#allocation7 + $0x180] sm:$0xff]  ;;  %v68_v1 = vld [vmem:[#allocation2 + $0x18] sm:$0xff]  ;;  %v65_v2 = vld [vmem:[#allocation2] sm:$0xff] }
  0x3e   :  { %419 = vmatpush3.msra.mxu1 %v111_v39  ;;  %382 = vmatprep.subr.mxu0 %v94_v40  ;;  %v73_v62 = vld [vmem:[#allocation7] sm:$0xff]  ;;  %v70_v4 = vld [vmem:[#allocation2 + $0x28] sm:$0xff]  ;;  %v72_v5 = vld [vmem:[#allocation2 + $0x38] sm:$0xff] }
  0x3f   :  { %420 = vmatprep.subr.mxu1 %v126_v41  ;;  %383 = vmatpush3.msra.mxu0 %v78_v42  ;;  %v105_v0 = vld [vmem:[#allocation7 + $0x100] sm:$0xff]  ;;  %v69_v6 = vld [vmem:[#allocation2 + $0x20] sm:$0xff]  ;;  %v295_v26 = vld [vmem:[#allocation5 + $0x8] sm:$0xff] }
  0x40   :  { %421 = vmatpush3.msra.mxu1 %v110_v43  ;;  %384 = vmatprep.subr.mxu0 %v93_v44  ;;  %v67_v3 = vld [vmem:[#allocation2 + $0x10] sm:$0xff]  ;;  %v359_v10 = vld [vmem:[%s612_s3] ss:$0 sm:$0xff] }
  0x41   :  { %422 = vmatprep.subr.mxu1 %v125_v45  ;;  %385 = vmatpush3.msra.mxu0 %v77_v46  ;;  %v71_v7 = vld [vmem:[#allocation2 + $0x30] sm:$0xff]  ;;  %v294_v20 = vld [vmem:[#allocation5] sm:$0xff] }
  0x42   :  { %423 = vmatpush3.msra.mxu1 %v109_v47  ;;  %386 = vmatprep.subr.mxu0 %v92_v48  ;;  %v360_v44 = vld [vmem:[%s613_s4] ss:$0 sm:$0xff] }
  0x43   :  { %424 = vmatprep.subr.mxu1 %v124_v49  ;;  %387 = vmatpush3.msra.mxu0 %v76_v50  ;;  %v361_v46 = vld [vmem:[%s614_s5] ss:$0 sm:$0xff] }
  0x44   :  { %425 = vmatpush3.msra.mxu1 %v108_v51  ;;  %388 = vmatprep.subr.mxu0 %v91_v52 }
  0x45   :  { %426 = vmatprep.subr.mxu1 %v123_v53  ;;  %389 = vmatpush3.msra.mxu0 %v75_v54 }
  0x46   :  { %427 = vmatpush3.msra.mxu1 %v107_v55  ;;  %390 = vmatprep.subr.mxu0 %v90_v56 }
  0x47   :  { %428 = vmatprep.subr.mxu1 %v122_v57  ;;  %391 = vmatpush3.msra.mxu0 %v74_v58 }
  0x48   :  { %429 = vmatpush3.msra.mxu1 %v106_v59  ;;  %392 = vmatprep.subr.mxu0 %v89_v60 }
  0x49   :  { %430 = vmatprep.subr.mxu1 %v121_v61  ;;  %393 = vmatpush3.msra.mxu0 %v73_v62 }
  0x4a   :  { %208 = vmatprep.mubr.f32.mxu0 %v66_v63  ;;  %431 = vmatpush3.msra.mxu1 %v105_v0 }
  0x4b   :  { %283 = vmatprep.mubr.f32.mxu1 %v68_v1  ;;  %209 = vmatmul.mubr.f32.vlgmr.msra.gmra.mxu0 %v65_v2 }
  0x4c   :  { %284 = vmatmul.mubr.f32.vlgmr.msra.gmra.mxu1 %v67_v3  ;;  %213 = vmatprep.mubr.f32.mxu0 %v70_v4 }
  0x4d   :  { %288 = vmatprep.mubr.f32.mxu1 %v72_v5 }
  0x4f   :  { %214 = vmatmul.mubr.f32.gmra.mxu0 %v69_v6 }
  0x50   :  { %289 = vmatmul.mubr.f32.gmra.mxu1 %v71_v7 }
 0x10b   :  { %v394_v8 = vpop.f32.mrf.mxu0 }
 0x10c   :  { %v432_v9 = vpop.f32.mrf.mxu1 }
 0x10d   :  { %v395_v11 = vpop.f32.mrf.mxu0 }
 0x10e   :  { %v433_v12 = vpop.f32.mrf.mxu1  ;;  %v396_v13 = vadd.f32 %v395_v11, %v394_v8 }
 0x10f   :  { %v397_v14 = vpop.f32.mrf.mxu0  ;;  %v434_v17 = vadd.f32 %v433_v12, %v432_v9 }
 0x110   :  { %v435_v15 = vpop.f32.mrf.mxu1  ;;  %v211_v16 = vadd.f32 %v396_v13, %v359_v10 }
 0x111   :  { %v398_v18 = vpop.f32.mrf.mxu0 }
 0x112   :  { %v436_v19 = vpop.f32.mrf.mxu1  ;;  %v286_v21 = vadd.f32 %v434_v17, %v211_v16  ;;  %v399_v22 = vadd.f32 %v398_v18, %v397_v14 }
 0x113   :  { %v437_v24 = vadd.f32 %v436_v19, %v435_v15 }
 0x114   :  { %v216_v23 = vadd.f32 %v399_v22, %v359_v10  ;;  %v296_v25 = vadd.f32 %v294_v20, %v286_v21 }
 0x116   :  { %v291_v27 = vadd.f32 %v437_v24, %v216_v23  ;;  %298 = vadd.xlane.f32.xlu0 %v296_v25 }
 0x118   :  { %v297_v28 = vadd.f32 %v295_v26, %v291_v27 }
 0x11a   :  { %300 = vadd.xlane.f32.xlu0 %v297_v28 }
 0x19f   :  { %v299_v29 = vpop.xlane.xlu0 %298 }
 0x1a0   :  { %v303_v30 = vmul.f32 0.0078125, %v299_v29 }
 0x1a2   :  { %v305_v31 = vsub.f32 %v296_v25, %v303_v30 }
 0x1a3   :  { %v301_v32 = vpop.xlane.xlu0 %300 }
 0x1a4   :  { %v304_v33 = vmul.f32 0.0078125, %v301_v32  ;;  %v307_v34 = vmul.f32 %v305_v31, %v305_v31 }
 0x1a6   :  { %v306_v35 = vsub.f32 %v297_v28, %v304_v33  ;;  %309 = vadd.xlane.f32.xlu1 %v307_v34 }
 0x1a8   :  { %v308_v36 = vmul.f32 %v306_v35, %v306_v35 }
 0x1aa   :  { %311 = vadd.xlane.f32.xlu1 %v308_v36 }
 0x22f   :  { %v310_v37 = vpop.xlane.xlu1 %309 }
 0x230   :  { %v313_v38 = vmul.f32 0.0078125, %v310_v37 }
 0x232   :  { %v315_v39 = vadd.f32 1e-12, %v313_v38 }
 0x233   :  { %v312_v40 = vpop.xlane.xlu1 %311 }
 0x234   :  { %446 = vrsqrt.f32 %v315_v39  ;;  %v314_v41 = vmul.f32 0.0078125, %v312_v40 }
 0x236   :  { %v316_v42 = vadd.f32 1e-12, %v314_v41 }
 0x238   :  { %448 = vrsqrt.f32 %v316_v42 }
 0x241   :  { %v447_v43 = vpop.eup %446 }
 0x242   :  { %v319_v45 = vmul.f32 %v447_v43, %v305_v31 }
 0x244   :  { %v328_v47 = vmul.f32 %v360_v44, %v319_v45 }
 0x245   :  { %v449_v48 = vpop.eup %448 }
 0x246   :  { %v320_v49 = vmul.f32 %v449_v48, %v306_v35  ;;  %v337_v50 = vadd.f32 %v361_v46, %v328_v47 }
 0x248   :  { %v329_v51 = vmul.f32 %v360_v44, %v320_v49  ;;  %339 = vst [vmem:[#allocation8] sm:$0xff] %v337_v50 }
 0x24a   :  { %v338_v52 = vadd.f32 %v361_v46, %v329_v51 }
 0x24c   :  { %340 = vst [vmem:[#allocation8 + $0x8] sm:$0xff] %v338_v52 }
 0x24d   :  { %521 = shalt.err (!%p518_p5)
}
 0x24e   :  { %352 = dma.vmem_to_hbm [thread:$0]  %s347_s19, 256, %s615_s6, [#allocation4], %s537_s24, %s537_s24, %s538_s25  }
 0x24f   :  { %534 = dma.done.wait [#allocation4], 256  }
 0x250   :  { %535 = vsyncadd [#allocation4], 4294967040 }
 0x251   :  { %356 = vsyncpa [#allocation3], 1 }
 0x252   :  { %357 = vsyncpa [#allocation6], 1 }
 0x253   :  { %358 = vsyncpa [#allocation4], 1 }

</bundles_post_ra>
